<compile_context>
chip_gen: v5e
topology: v5e:2x2
jax: 0.10.0
libtpu: 0.0.40
codegen_flags: <defaults>
</compile_context>

<pallas_src>
import functools
from math import sqrt

import jax
import jax.numpy as jnp
from jax.experimental import pallas as pl
from jax.experimental.pallas import tpu as pltpu

LANE = 128


def _round_up(n, m):
    return ((n + m - 1) // m) * m


# ------------------------- fused Pallas kernel -------------------------

def fused_cnn_kernel(xc_ref, wc_ref, cb_ref, ufw_ref, fb_ref, tgt_ref,
                     y_ref, loss_ref, *, num_classes, cp):
    """One batch tile of the whole CNN forward.

    xc_ref : (Bt, L, KEp)   im2col'ed zero-padded embeddings (bf16), streamed
    wc_ref : (KEp, Fp)      conv weight flattened to (K*E, F)   (bf16), resident
    cb_ref : (1, Fp)        conv bias (f32), resident
    ufw_ref: (2*Cp, Fp)     [U.weight ; final.weight] stacked (bf16), resident
    fb_ref : (1, Cp)        final.bias (f32), resident
    tgt_ref: (Bt, 1, Cp)    targets in [0,1] (f32, zero-padded classes)
    y_ref  : (Bt, 1, Cp)    logits (padded class columns are exactly 0)
    loss_ref:(1, 1, LANE)   lane-dense per-tile BCE partial sums (real slots only)
    """
    bt, l, kep = xc_ref.shape

    # ---- Conv1d (SAME padding folded into im2col) + tanh --------------------
    # Collapse (Bt, L) -> one M dim so the MXU sees a single large contraction.
    xc = xc_ref[...].reshape(bt * l, kep)                               # bf16
    acc = jnp.dot(xc, wc_ref[...], preferred_element_type=jnp.float32)  # (M, Fp)
    h = jnp.tanh(acc + cb_ref[...])                                     # f32
    h_bf = h.astype(jnp.bfloat16)

    # ---- Stacked projection: one matmul for both U and final ----------------
    # N = 2*Cp (=256 here) per pass instead of two half-width matmuls.
    proj = jax.lax.dot_general(
        h_bf, ufw_ref[...],
        dimension_numbers=(((1,), (1,)), ((), ())),
        preferred_element_type=jnp.float32)                             # (M, 2Cp)
    proj = proj.reshape(bt, l, 2 * cp)
    scores = proj[:, :, :cp]          # U.weight @ h^T         (Bt, L, Cp)
    h_final = proj[:, :, cp:]         # final.weight @ h^T      (Bt, L, Cp)

    # ---- Label attention: softmax over the sequence axis --------------------
    scores = scores - jnp.max(scores, axis=1, keepdims=True)
    e = jnp.exp(scores)
    denom = jnp.sum(e, axis=1, keepdims=True)
    alpha = e * pl.reciprocal(denom, approx=True)                       # (Bt,L,Cp)

    # ---- y[b,c] = sum_l alpha[b,l,c] * (h[b,l,:] @ final_w[c,:]) + fb[c] ----
    # Algebraically identical to final.weight.mul(alpha @ h).sum(-1) + bias,
    # but never materializes the (Bt, Cp, Fp) intermediate.
    y = jnp.sum(alpha * h_final, axis=1, keepdims=True) + fb_ref[...]   # (Bt,1,Cp)
    y_ref[...] = y

    # ---- BCEWithLogits (stable form), masked to the real class columns ------
    t = tgt_ref[...]
    elem = jnp.maximum(y, 0.0) - y * t + jnp.log1p(jnp.exp(-jnp.abs(y)))
    col = jax.lax.broadcasted_iota(jnp.int32, elem.shape, 2)
    masked = jnp.where(col < num_classes, elem, 0.0)
    # lane-dense (1,1,128) per-tile partial; the wrapper reduces tiles + lanes.
    loss_ref[...] = masked.reshape(-1, LANE).sum(axis=0).reshape(1, 1, LANE)


# ------------------------- tiling helpers -------------------------

def _pick_batch_tile(batch, per_batch_act_bytes, budget=8 << 20):
    """Largest divisor of `batch` whose activations fit the budget; prefer
    >=2 grid steps so the input tile DMA double-buffers behind compute."""
    divisors = [d for d in range(1, batch + 1) if batch % d == 0]
    fitting = [d for d in divisors if d * per_batch_act_bytes <= budget] or [1]
    bt = max(fitting)
    if bt == batch and batch > 1:
        proper = [d for d in fitting if d < batch]
        if proper:
            bt = max(proper)
    return bt


def _vmem_limit_bytes(bt, seq, kep, fp, cp):
    bf16, f32 = 2, 4
    need = (2 * bt * seq * kep * bf16           # double-buffered xc tile
            + (kep + 2 * cp) * fp * bf16        # resident matmul weights
            + (fp + cp) * f32                   # biases
            + bt * seq * fp * (f32 + bf16)      # h (f32) + bf16 copy
            + 3 * bt * seq * 2 * cp * f32       # proj / exp / alpha
            + 2 * (bt * cp + LANE) * f32)       # outputs (double-buffered)
    # v7x physical VMEM is 64 MiB; never request beyond it.
    return int(min(max(2 * need, 16 << 20), 64 << 20))


# ------------------------- wrapper -------------------------

def cnn_forward(x_ids, target, params):
    embed = params["embed"]        # (V, E)
    conv_w = params["conv_w"]      # (F, E, K)  -- PyTorch Conv1d layout
    conv_b = params["conv_b"]      # (F,)
    u_w = params["u_w"]            # (C, F)
    final_w = params["final_w"]    # (C, F)
    final_b = params["final_b"]    # (C,)

    B, L = x_ids.shape
    _, E = embed.shape
    F_, _, K = conv_w.shape
    C = u_w.shape[0]
    pad = K // 2
    KE = K * E
    KEp = _round_up(KE, LANE)
    Fp = _round_up(F_, LANE)
    Cp = _round_up(C, LANE)

    # WordRep: embedding lookup (glue; dropout is identity in eval mode).
    # TODO(synk): at production L (~2.5k) build the im2col columns inside the
    # kernel from the un-expanded (B, L+2p, E) tile (K shifted pl.ds slices)
    # to avoid the Kx HBM activation expansion; at toy scale the wide slab
    # keeps the single KEp-wide MXU contraction.
    x_emb = jnp.take(embed, x_ids, axis=0).astype(jnp.float32)      # (B, L, E)
    xp = jnp.pad(x_emb, ((0, 0), (pad, pad), (0, 0)))               # (B, L+2p, E)
    cols = jnp.concatenate([xp[:, k:k + L, :] for k in range(K)], axis=2)
    x_col = jnp.pad(cols, ((0, 0), (0, 0), (0, KEp - KE))).astype(jnp.bfloat16)

    # conv weight (F, E, K) -> (K*E, F): out[l,f] = sum_{k,e} xp[l+k,e] w[f,e,k]
    w_col = jnp.transpose(conv_w, (2, 1, 0)).reshape(KE, F_)
    w_col = jnp.pad(w_col, ((0, KEp - KE), (0, Fp - F_))).astype(jnp.bfloat16)
    cb = jnp.pad(conv_b, (0, Fp - F_)).reshape(1, Fp).astype(jnp.float32)

    # Stack U.weight and final.weight -> one (2*Cp, Fp) bf16 MXU operand.
    uw_p = jnp.pad(u_w, ((0, Cp - C), (0, Fp - F_)))
    fw_p = jnp.pad(final_w, ((0, Cp - C), (0, Fp - F_)))
    ufw = jnp.concatenate([uw_p, fw_p], axis=0).astype(jnp.bfloat16)  # (2Cp, Fp)
    fb = jnp.pad(final_b, (0, Cp - C)).reshape(1, Cp).astype(jnp.float32)
    tgt = jnp.pad(target, ((0, 0), (0, Cp - C))).astype(jnp.float32)
    tgt = tgt.reshape(B, 1, Cp)

    # Batch tile: biggest that fits a modest activation budget, kept small
    # enough that the grid has >=2 steps so DMA overlaps compute.
    per_batch_act = L * (2 * KEp * 2 + Fp * 6 + 2 * Cp * 12)
    Bt = _pick_batch_tile(B, per_batch_act)
    nb = B // Bt

    # TODO(synk): at production C (~1k+) add a second grid axis over class
    # tiles (B 'parallel' outer, C 'arbitrary' innermost) and compute h once
    # into a VMEM scratch under @pl.when(c == 0) so the conv matmul is not
    # redone per C tile.
    grid_spec = pltpu.PrefetchScalarGridSpec(
        num_scalar_prefetch=0,
        grid=(nb,),
        in_specs=[
            pl.BlockSpec((Bt, L, KEp), lambda b: (b, 0, 0)),   # streamed tile
            pl.BlockSpec((KEp, Fp), lambda b: (0, 0)),         # resident
            pl.BlockSpec((1, Fp), lambda b: (0, 0)),           # resident
            pl.BlockSpec((2 * Cp, Fp), lambda b: (0, 0)),      # resident
            pl.BlockSpec((1, Cp), lambda b: (0, 0)),           # resident
            pl.BlockSpec((Bt, 1, Cp), lambda b: (b, 0, 0)),    # streamed tile
        ],
        out_specs=(
            pl.BlockSpec((Bt, 1, Cp), lambda b: (b, 0, 0)),
            pl.BlockSpec((1, 1, LANE), lambda b: (b, 0, 0)),
        ),
    )

    y_pad, loss_parts = pl.pallas_call(
        functools.partial(fused_cnn_kernel, num_classes=C, cp=Cp),
        grid_spec=grid_spec,
        out_shape=(jax.ShapeDtypeStruct((B, 1, Cp), jnp.float32),
                   jax.ShapeDtypeStruct((nb, 1, LANE), jnp.float32)),
        compiler_params=pltpu.CompilerParams(
            dimension_semantics=("parallel",),
            vmem_limit_bytes=_vmem_limit_bytes(Bt, L, KEp, Fp, Cp)),
    )(x_col, w_col, cb, ufw, fb, tgt)

    y = y_pad[:, 0, :C]
    loss = jnp.sum(loss_parts) / (B * C)   # BCEWithLogitsLoss reduction='mean'
    return y, loss


# ------------------------- pure-JAX f32 reference -------------------------

def reference_forward(x_ids, target, params):
    embed, conv_w, conv_b = params["embed"], params["conv_w"], params["conv_b"]
    u_w, final_w, final_b = params["u_w"], params["final_w"], params["final_b"]
    K = conv_w.shape[2]
    x_emb = jnp.take(embed, x_ids, axis=0)                  # (B, L, E)
    x_ncl = jnp.transpose(x_emb, (0, 2, 1))                 # (B, E, L)
    out = jax.lax.conv_general_dilated(
        x_ncl, conv_w, window_strides=(1,), padding=[(K // 2, K // 2)],
        dimension_numbers=("NCH", "OIH", "NCH"))
    h = jnp.tanh(jnp.transpose(out + conv_b[None, :, None], (0, 2, 1)))
    scores = jnp.einsum("cf,blf->bcl", u_w, h)
    alpha = jax.nn.softmax(scores, axis=2)
    m = jnp.einsum("bcl,blf->bcf", alpha, h)
    y = jnp.sum(final_w[None] * m, axis=2) + final_b[None]
    elem = jnp.maximum(y, 0.0) - y * target + jnp.log1p(jnp.exp(-jnp.abs(y)))
    return y, jnp.mean(elem)


# ------------------------- main -------------------------

if __name__ == "__main__":
    # small, self-consistent shapes
    B, L = 2, 16          # batch, sequence length
    V, E = 50, 32         # vocab size (len(w2ind)+2), embed_size
    F_ = 32               # num_filter_maps
    K = 3                 # filter_size (padding = floor(K/2))
    C = 8                 # class_nums

    key = jax.random.PRNGKey(0)
    k_emb, k_cw, k_cb, k_uw, k_fw, k_fb, k_ids, k_tgt = jax.random.split(key, 8)

    # Embedding ~ N(0,1), padding_idx=0 row zeroed
    embed = jax.random.normal(k_emb, (V, E), jnp.float32)
    embed = embed.at[0].set(0.0)

    # Conv1d weight: xavier_uniform; bias: PyTorch default uniform(+-1/sqrt(fan_in))
    a = sqrt(6.0 / (E * K + F_ * K))
    conv_w = jax.random.uniform(k_cw, (F_, E, K), jnp.float32, -a, a)
    bb = 1.0 / sqrt(E * K)
    conv_b = jax.random.uniform(k_cb, (F_,), jnp.float32, -bb, bb)

    # OutputLayer linears: xavier_uniform weights
    a_lin = sqrt(6.0 / (F_ + C))
    u_w = jax.random.uniform(k_uw, (C, F_), jnp.float32, -a_lin, a_lin)
    final_w = jax.random.uniform(k_fw, (C, F_), jnp.float32, -a_lin, a_lin)
    bl = 1.0 / sqrt(F_)
    final_b = jax.random.uniform(k_fb, (C,), jnp.float32, -bl, bl)

    params = dict(embed=embed, conv_w=conv_w, conv_b=conv_b,
                  u_w=u_w, final_w=final_w, final_b=final_b)

    x_ids = jax.random.randint(k_ids, (B, L), 0, V, dtype=jnp.int32)
    target = jax.random.bernoulli(k_tgt, 0.3, (B, C)).astype(jnp.float32)

    # TODO(synk): dropout (train-mode) and the graph-entity embedding branch of
    # WordRep are not exercised by this forward pass (eval mode / unused output).
    y, loss = jax.jit(cnn_forward)(x_ids, target, params)
    jax.block_until_ready((y, loss))

    y_ref, loss_ref = reference_forward(x_ids, target, params)
    # Tolerance accounts for bf16 MXU operands (f32 accumulation) and the
    # approximate EUP reciprocal in the softmax, vs the pure-f32 reference.
    assert jnp.allclose(y, y_ref, atol=3e-2, rtol=3e-2), "logits mismatch"
    assert jnp.allclose(loss, loss_ref, atol=3e-2, rtol=3e-2), "loss mismatch"

    print("KERNEL_OK")
</pallas_src>

<mosaic_0001>
module attributes {stable_mosaic.version = 11 : i64} {
  func.func @fused_cnn_kernel(%arg0: i32, %arg1: memref<1x16x128xbf16, #tpu.memory_space<vmem>>, %arg2: memref<128x128xbf16, #tpu.memory_space<vmem>>, %arg3: memref<1x128xf32, #tpu.memory_space<vmem>>, %arg4: memref<256x128xbf16, #tpu.memory_space<vmem>>, %arg5: memref<1x128xf32, #tpu.memory_space<vmem>>, %arg6: memref<1x1x128xf32, #tpu.memory_space<vmem>>, %arg7: memref<1x1x128xf32, #tpu.memory_space<vmem>>, %arg8: memref<1x1x128xf32, #tpu.memory_space<vmem>>) attributes {dimension_semantics = [#tpu.dimension_semantics<parallel>], iteration_bounds = array<i64: 2>, scalar_prefetch = 0 : i64, scratch_operands = 0 : i64, tpu.core_type = #tpu.core_type<tc>, window_params = [{transform_indices = @transform_0, window_bounds = array<i64: 1, 16, 128>}, {pipeline_mode = #tpu.pipeline_mode<synchronous>, transform_indices = @transform_1, window_bounds = array<i64: 128, 128>}, {pipeline_mode = #tpu.pipeline_mode<synchronous>, transform_indices = @transform_2, window_bounds = array<i64: 1, 128>}, {pipeline_mode = #tpu.pipeline_mode<synchronous>, transform_indices = @transform_3, window_bounds = array<i64: 256, 128>}, {pipeline_mode = #tpu.pipeline_mode<synchronous>, transform_indices = @transform_4, window_bounds = array<i64: 1, 128>}, {transform_indices = @transform_5, window_bounds = array<i64: 1, 1, 128>}, {transform_indices = @transform_6, window_bounds = array<i64: 1, 1, 128>}, {transform_indices = @transform_7, window_bounds = array<i64: 1, 1, 128>}]} {
    %c0 = arith.constant 0 : index
    %c0_0 = arith.constant 0 : index
    %c0_1 = arith.constant 0 : index
    %0 = vector.load %arg1[%c0, %c0_0, %c0_1] : memref<1x16x128xbf16, #tpu.memory_space<vmem>>, vector<1x16x128xbf16>
    %1 = vector.shape_cast %0 : vector<1x16x128xbf16> to vector<16x128xbf16>
    %c0_2 = arith.constant 0 : index
    %c0_3 = arith.constant 0 : index
    %2 = vector.load %arg2[%c0_2, %c0_3] : memref<128x128xbf16, #tpu.memory_space<vmem>>, vector<128x128xbf16>
    %cst = arith.constant dense<0.000000e+00> : vector<16x128xf32>
    %3 = tpu.matmul %1, %2, %cst {dimension_numbers = #tpu.dot_dimension_numbers<[1], [0], [0], [1], [0, 0, 1, 1], [], []>} : vector<16x128xbf16>, vector<128x128xbf16>, vector<16x128xf32> -> vector<16x128xf32>
    %c0_4 = arith.constant 0 : index
    %c0_5 = arith.constant 0 : index
    %4 = vector.load %arg3[%c0_4, %c0_5] : memref<1x128xf32, #tpu.memory_space<vmem>>, vector<1x128xf32>
    %5 = vector.broadcast %4 : vector<1x128xf32> to vector<16x128xf32>
    %6 = arith.addf %3, %5 : vector<16x128xf32>
    %7 = math.tanh %6 : vector<16x128xf32>
    %8 = arith.truncf %7 : vector<16x128xf32> to vector<16x128xbf16>
    %c0_6 = arith.constant 0 : index
    %c0_7 = arith.constant 0 : index
    %9 = vector.load %arg4[%c0_6, %c0_7] : memref<256x128xbf16, #tpu.memory_space<vmem>>, vector<256x128xbf16>
    %cst_8 = arith.constant dense<0.000000e+00> : vector<16x256xf32>
    %10 = tpu.matmul %8, %9, %cst_8 {dimension_numbers = #tpu.dot_dimension_numbers<[1], [1], [0], [0], [0, 0, 1, 0], [], []>} : vector<16x128xbf16>, vector<256x128xbf16>, vector<16x256xf32> -> vector<16x256xf32>
    %11 = vector.shape_cast %10 : vector<16x256xf32> to vector<1x16x256xf32>
    %12 = vector.extract_strided_slice %11 {offsets = [0, 0, 0], sizes = [1, 16, 128], strides = [1, 1, 1]} : vector<1x16x256xf32> to vector<1x16x128xf32>
    %13 = vector.extract_strided_slice %11 {offsets = [0, 0, 128], sizes = [1, 16, 128], strides = [1, 1, 1]} : vector<1x16x256xf32> to vector<1x16x128xf32>
    %cst_9 = arith.constant dense<0xFF800000> : vector<1x128xf32>
    %14 = vector.multi_reduction <maximumf>, %12, %cst_9 [1] : vector<1x16x128xf32> to vector<1x128xf32>
    %15 = vector.shape_cast %14 : vector<1x128xf32> to vector<1x1x128xf32>
    %16 = vector.broadcast %15 : vector<1x1x128xf32> to vector<1x16x128xf32>
    %17 = arith.subf %12, %16 : vector<1x16x128xf32>
    %18 = math.exp %17 : vector<1x16x128xf32>
    %cst_10 = arith.constant dense<0.000000e+00> : vector<1x128xf32>
    %19 = vector.multi_reduction <add>, %18, %cst_10 [1] : vector<1x16x128xf32> to vector<1x128xf32>
    %20 = vector.shape_cast %19 : vector<1x128xf32> to vector<1x1x128xf32>
    %21 = tpu.reciprocal %20 {approx = true} : vector<1x1x128xf32> -> vector<1x1x128xf32>
    %22 = vector.broadcast %21 : vector<1x1x128xf32> to vector<1x16x128xf32>
    %23 = arith.mulf %18, %22 : vector<1x16x128xf32>
    %24 = arith.mulf %23, %13 : vector<1x16x128xf32>
    %cst_11 = arith.constant dense<0.000000e+00> : vector<1x128xf32>
    %25 = vector.multi_reduction <add>, %24, %cst_11 [1] : vector<1x16x128xf32> to vector<1x128xf32>
    %26 = vector.shape_cast %25 : vector<1x128xf32> to vector<1x1x128xf32>
    %c0_12 = arith.constant 0 : index
    %c0_13 = arith.constant 0 : index
    %27 = vector.load %arg5[%c0_12, %c0_13] : memref<1x128xf32, #tpu.memory_space<vmem>>, vector<1x128xf32>
    %28 = vector.shape_cast %27 : vector<1x128xf32> to vector<1x1x128xf32>
    %29 = arith.addf %26, %28 : vector<1x1x128xf32>
    %c0_14 = arith.constant 0 : index
    %c0_15 = arith.constant 0 : index
    %c0_16 = arith.constant 0 : index
    %30 = vector.load %arg7[%c0_14, %c0_15, %c0_16] : memref<1x1x128xf32, #tpu.memory_space<vmem>>, vector<1x1x128xf32>
    tpu.vector_store %arg7[%c0_14, %c0_15, %c0_16], %29 {strides = array<i32>} : memref<1x1x128xf32, #tpu.memory_space<vmem>>, vector<1x1x128xf32>,
    %c0_17 = arith.constant 0 : index
    %c0_18 = arith.constant 0 : index
    %c0_19 = arith.constant 0 : index
    %31 = vector.load %arg6[%c0_17, %c0_18, %c0_19] : memref<1x1x128xf32, #tpu.memory_space<vmem>>, vector<1x1x128xf32>
    %cst_20 = arith.constant 0.000000e+00 : f32
    %32 = vector.broadcast %cst_20 : f32 to vector<1x1x128xf32>
    %33 = arith.maximumf %29, %32 : vector<1x1x128xf32>
    %34 = arith.mulf %29, %31 : vector<1x1x128xf32>
    %35 = arith.subf %33, %34 : vector<1x1x128xf32>
    %36 = math.absf %29 : vector<1x1x128xf32>
    %cst_21 = arith.constant 0.000000e+00 : f32
    %37 = vector.broadcast %cst_21 : f32 to vector<1x1x128xf32>
    %38 = arith.subf %37, %36 : vector<1x1x128xf32>
    %39 = math.exp %38 : vector<1x1x128xf32>
    %40 = math.log1p %39 : vector<1x1x128xf32>
    %41 = arith.addf %35, %40 : vector<1x1x128xf32>
    %42 = tpu.iota {dimensions = array<i32: 2>} : vector<1x1x128xi32>
    %c8_i32 = arith.constant 8 : i32
    %43 = vector.broadcast %c8_i32 : i32 to vector<1x1x128xi32>
    %44 = arith.cmpi slt, %42, %43 : vector<1x1x128xi32>
    %cst_22 = arith.constant 0.000000e+00 : f32
    %45 = vector.broadcast %cst_22 : f32 to vector<1x1x128xf32>
    %46 = arith.select %44, %41, %45 : vector<1x1x128xi1>, vector<1x1x128xf32>
    %47 = vector.shape_cast %46 : vector<1x1x128xf32> to vector<1x128xf32>
    %cst_23 = arith.constant dense<0.000000e+00> : vector<128xf32>
    %48 = vector.multi_reduction <add>, %47, %cst_23 [0] : vector<1x128xf32> to vector<128xf32>
    %49 = vector.shape_cast %48 : vector<128xf32> to vector<1x1x128xf32>
    %c0_24 = arith.constant 0 : index
    %c0_25 = arith.constant 0 : index
    %c0_26 = arith.constant 0 : index
    %50 = vector.load %arg8[%c0_24, %c0_25, %c0_26] : memref<1x1x128xf32, #tpu.memory_space<vmem>>, vector<1x1x128xf32>
    tpu.vector_store %arg8[%c0_24, %c0_25, %c0_26], %49 {strides = array<i32>} : memref<1x1x128xf32, #tpu.memory_space<vmem>>, vector<1x1x128xf32>,
    return
  }
  func.func @transform_0(%arg0: i32) -> (i32, i32, i32) {
    %c0_i32 = arith.constant 0 : i32
    %c0_i32_0 = arith.constant 0 : i32
    %c0_i32_1 = arith.constant 0 : i32
    return %arg0, %c0_i32, %c0_i32_0 : i32, i32, i32
  }
  func.func @transform_1(%arg0: i32) -> (i32, i32) {
    %c0_i32 = arith.constant 0 : i32
    %c0_i32_0 = arith.constant 0 : i32
    %c0_i32_1 = arith.constant 0 : i32
    return %c0_i32, %c0_i32_0 : i32, i32
  }
  func.func @transform_2(%arg0: i32) -> (i32, i32) {
    %c0_i32 = arith.constant 0 : i32
    %c0_i32_0 = arith.constant 0 : i32
    %c0_i32_1 = arith.constant 0 : i32
    return %c0_i32, %c0_i32_0 : i32, i32
  }
  func.func @transform_3(%arg0: i32) -> (i32, i32) {
    %c0_i32 = arith.constant 0 : i32
    %c0_i32_0 = arith.constant 0 : i32
    %c0_i32_1 = arith.constant 0 : i32
    return %c0_i32, %c0_i32_0 : i32, i32
  }
  func.func @transform_4(%arg0: i32) -> (i32, i32) {
    %c0_i32 = arith.constant 0 : i32
    %c0_i32_0 = arith.constant 0 : i32
    %c0_i32_1 = arith.constant 0 : i32
    return %c0_i32, %c0_i32_0 : i32, i32
  }
  func.func @transform_5(%arg0: i32) -> (i32, i32, i32) {
    %c0_i32 = arith.constant 0 : i32
    %c0_i32_0 = arith.constant 0 : i32
    %c0_i32_1 = arith.constant 0 : i32
    return %arg0, %c0_i32, %c0_i32_0 : i32, i32, i32
  }
  func.func @transform_6(%arg0: i32) -> (i32, i32, i32) {
    %c0_i32 = arith.constant 0 : i32
    %c0_i32_0 = arith.constant 0 : i32
    %c0_i32_1 = arith.constant 0 : i32
    return %arg0, %c0_i32, %c0_i32_0 : i32, i32, i32
  }
  func.func @transform_7(%arg0: i32) -> (i32, i32, i32) {
    %c0_i32 = arith.constant 0 : i32
    %c0_i32_0 = arith.constant 0 : i32
    %c0_i32_1 = arith.constant 0 : i32
    return %arg0, %c0_i32, %c0_i32_0 : i32, i32, i32
  }
}

</mosaic_0001>

<bundles_post_ra>
// kernel: cnn_forward.1
= control target key start
LH: loop header
LB: loop body
LE: loop exit
PB: predicated region body
PF: predicated region fallthrough
CT: control target
= control target key end

     0   :  { %13 = vsyncpa [#allocation3], 0  ;;  %s1175_s0 = inlined_call_operand.vmem [shape: bf16[2,16,128], index: 0, kind: input, shape index: {}]   ;;  %s1176_s1 = inlined_call_operand.vmem [shape: bf16[128,128], index: 1, kind: input, shape index: {}]   ;;  %s1177_s2 = inlined_call_operand.vmem [shape: f32[1,128], index: 2, kind: input, shape index: {}]   ;;  %s1178_s3 = inlined_call_operand.vmem [shape: bf16[256,128], index: 3, kind: input, shape index: {}]   ;;  %s1179_s4 = inlined_call_operand.vmem [shape: f32[1,128], index: 4, kind: input, shape index: {}]   ;;  %s1180_s5 = inlined_call_operand.vmem [shape: f32[2,1,128], index: 5, kind: input, shape index: {}]   ;;  %s1181_s6 = inlined_call_operand.hbm [shape: f32[2,1,128], index: 6, kind: output, shape index: {0}]   ;;  %s1182_s7 = inlined_call_operand.vmem [shape: f32[2,1,128], index: 7, kind: output, shape index: {1}]  }
   0x1   :  { %15 = vsyncpa [#allocation3 + $0x1], 0  ;;  %s1001_s24 = smov 0   ;;  %s1003_s25 = smov 0  }
   0x2   :  { %s1005_s26 = smov 0   ;;  %s1007_s27 = smov 0  }
   0x3 LB: > { %s1022_s28 = sadd.s32 4294967295, %s959_s27   ;;  %s709_s29 = sadd.s32 4294967294, %s959_s27   ;;  %s959_s27 = sphi %s1007_s27, %s1188_s27   ;;  %s955_s26 = sphi %s1005_s26, %s1187_s26   ;;  %s951_s25 = sphi %s1003_s25, %s1186_s25   ;;  %s947_s24 = sphi %s1001_s24, %s1185_s24  }
   0x4   : > { %s1026_s30 = sadd.s32 1, %s959_s27   ;;  %s164_s8 = sadd.s32 1, %s955_s26 }
   0x5   : > { %s161_s9 = ssub.s32 %s959_s27, %s1026_s30  ;;  %p174_p0 = scmp.ne.s32.totalorder %s955_s26, %s951_s25 }
   0x6   : > { %p162_p1 = scmp.eq.s32.totalorder %s161_s9, 0  ;;  %p175_p2 = scmp.eq.s32.totalorder %s1022_s28, 1 }
   0x7   : > { %p180_p3 = scmp.ne.s32.totalorder %s951_s25, %s947_s24  ;;  %p181_p4 = scmp.eq.s32.totalorder %s709_s29, 1 }
   0x8   : > { %s1037_s10 = scalar_select %p162_p1, %s955_s26, %s164_s8  }
   0x9   : > { %p1039_p5 = por %p175_p2, %p174_p0  ;;  %p1043_p6 = por %p181_p4, %p180_p3 }
   0xa   : > { %p712_p7 = scmp.ge.s32.totalorder %s959_s27, 1  ;;  %p251_p8 = scmp.lt.s32.totalorder %s959_s27, 3 }
   0xc   : > { %p252_p9 = pnand %p712_p7, %p251_p8 }
   0xd   : > { %p288_p10 = scmp.lt.s32.totalorder (!%p252_p9), %s1022_s28, 1  ;;  %s281_s15 = sand.u32 (!%p252_p9), 1, %s951_s25  }
   0xe   : > { %255 = sbr.rel (%p252_p9) target bundleno = 426 (0x1aa), region = 44  ;;  %s619_s17 = scalar_lea.hbm (!%p252_p9), %s1181_s6, %s1022_s28 }
   0xf   : > { %s282_s20 = scalar_lea.vmem (!%p252_p9), [#allocation2], %s281_s15  ;;  %s623_s22 = sshll.u32 (!%p252_p9), %s619_s17, 4  ;;  %s624_s22 = int_to_ptr.hbm [resolvable:$true] %s623_s22 }
  0x10   : > { %s608_s29 = scalar_lea.sflag (!%p252_p9), [#allocation3], %s281_s15  ;;  %s911_s8 = sshra.s32 (!%p252_p9), %s624_s22, 4  ;;  %s912_s8 = int_to_ptr.hbm [resolvable:$true] %s911_s8 }
  0x11   : > { %s913_s13 = scalar_lea.hbm (!%p252_p9), %s912_s8, 1  ;;  %p918_p0 = scmp.lt.s32.totalorder (!%p252_p9), %s912_s8, %s1181_s6 }
  0x12   : > { %p914_p11 = scmp.ne.s32.totalorder (!%p252_p9), %s912_s8, %s913_s13 }
  0x13   : > { %v826_v0 = vld [vmem:[%s1176_s1 + $0x38] sm:$0xff]  ;;  %v825_v1 = vld [vmem:[%s1176_s1 + $0x30] sm:$0xff]  ;;  %v824_v4 = vld [vmem:[%s1176_s1 + $0x28] sm:$0xff]  ;;  %s1087_s23 = scalar_select %p288_p10, %s1022_s28, 1 }
  0x14   : > { %375 = vmatpush.bf16.msra.mxu0 %v826_v0  ;;  %v834_v2 = vld [vmem:[%s1178_s3 + $0x38] sm:$0xff]  ;;  %v833_v5 = vld [vmem:[%s1178_s3 + $0x30] sm:$0xff]  ;;  %v823_v7 = vld [vmem:[%s1176_s1 + $0x20] sm:$0xff]  ;;  %p915_p12 = pnand %p914_p11, %p1039_p5 }
  0x15   : > { %v842_v3 = vld [vmem:[%s1178_s3 + $0x78] sm:$0xff]  ;;  %520 = vmatpush.bf16.xpose.msra.mxu1 %v834_v2  ;;  %v841_v6 = vld [vmem:[%s1178_s3 + $0x70] sm:$0xff]  ;;  %v832_v9 = vld [vmem:[%s1178_s3 + $0x28] sm:$0xff]  ;;  %s817_s9 = sshll.u32 %s1087_s23, 3 }
  0x16   : > { %534 = vmatpush.bf16.xpose.msra.mxu2 %v842_v3  ;;  %v822_v8 = vld [vmem:[%s1176_s1 + $0x18] sm:$0xff]  ;;  %v840_v10 = vld [vmem:[%s1178_s3 + $0x68] sm:$0xff]  ;;  %v821_v11 = vld [vmem:[%s1176_s1 + $0x10] sm:$0xff]  ;;  %s292_s21 = scalar_lea.vmem %s1175_s0, %s817_s9  ;;  %p916_p13 = pneg %p915_p12 }
  0x17   : > { %v820_v12 = vld [vmem:[%s1176_s1 + $0x8] sm:$0xff]  ;;  %v831_v13 = vld [vmem:[%s1178_s3 + $0x20] sm:$0xff]  ;;  %v830_v17 = vld [vmem:[%s1178_s3 + $0x18] sm:$0xff]  ;;  %s917_s9 = scalar_lea.hbm %s1181_s6, 2 }
  0x18   : > { %376 = vmatpush.bf16.msra.mxu0 %v825_v1  ;;  %v839_v14 = vld [vmem:[%s1178_s3 + $0x60] sm:$0xff]  ;;  %v838_v18 = vld [vmem:[%s1178_s3 + $0x58] sm:$0xff]  ;;  %v829_v19 = vld [vmem:[%s1178_s3 + $0x10] sm:$0xff]  ;;  %p919_p1 = scmp.lt.s32.totalorder %s917_s9, %s913_s13 }
  0x19   : > { %v819_v15 = vld [vmem:[%s1176_s1] sm:$0xff]  ;;  %v837_v20 = vld [vmem:[%s1178_s3 + $0x50] sm:$0xff]  ;;  %v828_v21 = vld [vmem:[%s1178_s3 + $0x8] sm:$0xff] }
  0x1a   : > { %v818_v16 = vld [vmem:[%s292_s21] sm:$0xff]  ;;  %v836_v22 = vld [vmem:[%s1178_s3 + $0x48] sm:$0xff]  ;;  %s621_s21 = sshll.u32 %s282_s20, 4  ;;  %p920_p2 = por %p919_p1, %p918_p0  ;;  %s622_s21 = int_to_ptr.vmem [resolvable:$true] %s621_s21 }
  0x1b   : > { %v827_v23 = vld [vmem:[%s1178_s3] sm:$0xff] }
  0x1c   : > { %377 = vmatpush.bf16.msra.mxu0 %v824_v4  ;;  %v835_v24 = vld [vmem:[%s1178_s3 + $0x40] sm:$0xff]  ;;  %p921_p3 = pnand %p920_p2, %p916_p13 }
  0x1d   : > { %521 = vmatpush.bf16.xpose.msra.mxu1 %v833_v5  ;;  %v882_v26 = vld [vmem:[%s1177_s2] ss:$0 sm:$0xff] }
  0x1e   : > { %535 = vmatpush.bf16.xpose.msra.mxu2 %v841_v6  ;;  %v580_v4 = vld [vmem:[%s1179_s4] sm:$0x1] }
  0x20   : > { %378 = vmatpush.bf16.msra.mxu0 %v823_v7 }
  0x24   : > { %379 = vmatpush.bf16.msra.mxu0 %v822_v8 }
  0x25   : > { %522 = vmatpush.bf16.xpose.msra.mxu1 %v832_v9 }
  0x26   : > { %536 = vmatpush.bf16.xpose.msra.mxu2 %v840_v10 }
  0x28   : > { %380 = vmatpush.bf16.msra.mxu0 %v821_v11 }
  0x2c   : > { %381 = vmatpush.bf16.msra.mxu0 %v820_v12 }
  0x2d   : > { %523 = vmatpush.bf16.xpose.msra.mxu1 %v831_v13 }
  0x2e   : > { %537 = vmatpush.bf16.xpose.msra.mxu2 %v839_v14 }
  0x30   : > { %382 = vmatpush.bf16.msra.mxu0 %v819_v15 }
  0x33   : > { %383 = vmatmul.bf16.vlgmr.msra.gmra.mxu0 %v818_v16 }
  0x35   : > { %524 = vmatpush.bf16.xpose.msra.mxu1 %v830_v17 }
  0x36   : > { %538 = vmatpush.bf16.xpose.msra.mxu2 %v838_v18 }
  0x3d   : > { %525 = vmatpush.bf16.xpose.msra.mxu1 %v829_v19 }
  0x3e   : > { %539 = vmatpush.bf16.xpose.msra.mxu2 %v837_v20 }
  0x45   : > { %526 = vmatpush.bf16.xpose.msra.mxu1 %v828_v21 }
  0x46   : > { %540 = vmatpush.bf16.xpose.msra.mxu2 %v836_v22 }
  0x4d   : > { %527 = vmatpush.bf16.xpose.msra.mxu1 %v827_v23 }
  0x4e   : > { %541 = vmatpush.bf16.xpose.msra.mxu2 %v835_v24 }
  0xb0   : > { %v384_v25 = vpop.f32.mrf.mxu0 }
  0xb1   : > { %v385_v27 = vadd.f32 %v882_v26, %v384_v25 }
  0xb3   : > { %883 = vtanh.f32 %v385_v27 }
  0xb8   : > { %v386_v28 = vpop.f32.mrf.mxu0 }
  0xb9   : > { %v387_v29 = vadd.f32 %v882_v26, %v386_v28  ;;  %v884_v30 = vpop.eup %883 }
  0xbb   : > { %885 = vtanh.f32 %v387_v29 }
  0xc1   : > { %v886_v31 = vpop.eup %885 }
  0xc2   : > { %v391_v32 = vpack.c.bf16 %v886_v31, %v884_v30 }
  0xc4   : > { %528 = vmatmul.bf16.vlgmr.msra.gmra.mxu1 %v391_v32  ;;  %542 = vmatmul.bf16.vlgmr.msra.gmra.mxu2 %v391_v32 }
 0x141   : > { %v529_v33 = vpop.f32.mrf.mxu1 }
 0x147   : > { %v543_v54 = vpop.f32.mrf.mxu2 }
 0x149   : > { %v531_v34 = vpop.f32.mrf.mxu1 }
 0x14a   : > { %v548_v35 = vmax.f32 %v529_v33, %v531_v34 }
 0x14c   : > { %v549_v36 = vrot.slane %v548_v35, 4 }
 0x14e   : > { %v550_v37 = vmax.f32 %v548_v35, %v549_v36 }
 0x14f   : > { %v545_v59 = vpop.f32.mrf.mxu2 }
 0x150   : > { %v551_v38 = vrot.slane %v550_v37, 2 }
 0x152   : > { %v552_v39 = vmax.f32 %v550_v37, %v551_v38 }
 0x154   : > { %v553_v40 = vrot.slane %v552_v39, 1 }
 0x156   : > { %v554_v41 = vmax.f32 %v552_v39, %v553_v40 }
 0x158   : > { %v555_v42 = vsub.f32 %v529_v33, %v554_v41  ;;  %v556_v43 = vsub.f32 %v531_v34, %v554_v41 }
 0x15a   : > { %v557_v44 = vmul.f32 1.442695, %v555_v42  ;;  %v559_v45 = vmul.f32 1.442695, %v556_v43 }
 0x15c   : > { %887 = vpow2.f32 %v557_v44 }
 0x15d   : > { %889 = vpow2.f32 %v559_v45 }
 0x162   : > { %v888_v46 = vpop.eup %887 }
 0x163   : > { %v890_v47 = vpop.eup %889 }
 0x164   : > { %v561_v48 = vadd.f32 %v890_v47, %v888_v46 }
 0x166   : > { %v562_v49 = vrot.slane %v561_v48, 4 }
 0x168   : > { %v563_v50 = vadd.f32 %v562_v49, %v561_v48 }
 0x16a   : > { %v564_v51 = vrot.slane %v563_v50, 2 }
 0x16c   : > { %v565_v52 = vadd.f32 %v564_v51, %v563_v50 }
 0x16e   : > { %v566_v53 = vrot.slane %v565_v52, 1 }
 0x170   : > { %v567_v55 = vadd.f32 %v566_v53, %v565_v52 }
 0x172   : > { %891 = vrcp.f32 %v567_v55 }
 0x178   : > { %v892_v56 = vpop.eup %891 }
 0x179   : > { %v569_v57 = vmul.f32 %v892_v56, %v888_v46  ;;  %v570_v58 = vmul.f32 %v892_v56, %v890_v47 }
 0x17b   : > { %v571_v60 = vmul.f32 %v569_v57, %v543_v54  ;;  %v572_v61 = vmul.f32 %v570_v58, %v545_v59 }
 0x17d   : > { %v573_v62 = vadd.f32 %v572_v61, %v571_v60 }
 0x17f   : > { %v574_v63 = vrot.slane %v573_v62, 4 }
 0x181   : > { %v575_v0 = vadd.f32 %v574_v63, %v573_v62 }
 0x183   : > { %v576_v1 = vrot.slane %v575_v0, 2 }
 0x185   : > { %v577_v2 = vadd.f32 %v576_v1, %v575_v0 }
 0x187   : > { %v578_v3 = vrot.slane %v577_v2, 1 }
 0x189   : > { %v579_v5 = vadd.f32 %v578_v3, %v577_v2 }
 0x18b   : > { %v581_v6 = vadd.f32 %v580_v4, %v579_v5 }
 0x18d   : > { %v587_v7 = vand.u32 2147483647, %v581_v6  ;;  %582 = vst [vmem:[%s282_s20] sm:$0x1] %v581_v6 }
 0x18e   : > { %924 = shalt.err (!%p921_p3)
}
 0x18f   : > { %843 = dma.vmem_to_hbm [thread:$0]  (%p1039_p5), %s622_s21, 16, %s624_s22, %s608_s29   ;;  %v588_v8 = vsub.f32 0.0, %v587_v7  ;;  %v601_v14 = vlaneseq  ;;  %v584_v16 = vmax.f32 %v581_v6, 0.0 }
 0x190   : > { %s295_s19 = scalar_lea.vmem %s1180_s5, %s1087_s23  ;;  %s298_s21 = scalar_lea.vmem %s1182_s7, %s1087_s23 }
 0x191   : > { %v589_v9 = vmul.f32 1.442695, %v588_v8  ;;  %v583_v13 = vld [vmem:[%s295_s19] sm:$0x1]  ;;  %v602_v19 = vand.u32 127, %v601_v14 }
 0x192   : > { %v585_v17 = vmul.f32 %v583_v13, %v581_v6 }
 0x193   : > { %893 = vpow2.f32 %v589_v9  ;;  %vm603_vm1 = vcmp.lt.s32.totalorder %v602_v19, 8 }
 0x194   : > { %v586_v23 = vsub.f32 %v584_v16, %v585_v17 }
 0x199   : > { %v894_v10 = vpop.eup %893 }
 0x19a   : > { %v591_v11 = vadd.f32 1.0, %v894_v10  ;;  %v594_v12 = vmul.f32 -0.5, %v894_v10  ;;  %v597_v18 = vand.u32 2147483647, %v894_v10 }
 0x19c   : > { %895 = vlog2.f32 %v591_v11  ;;  %v595_v15 = vadd.f32 1.0, %v594_v12  ;;  %vm598_vm0 = vcmp.lt.f32.partialorder %v597_v18, 0.0004427343 }
 0x19e   : > { %v596_v22 = vmul.f32 %v894_v10, %v595_v15 }
 0x1a2   : > { %v896_v20 = vpop.eup %895 }
 0x1a3   : > { %v593_v21 = vmul.f32 0.6931472, %v896_v20 }
 0x1a5   : > { %v599_v24 = vsel %vm598_vm0, %v596_v22, %v593_v21 }
 0x1a6   : > { %v600_v25 = vadd.f32 %v599_v24, %v586_v23 }
 0x1a8   : > { %v604_v26 = vsel %vm603_vm1, %v600_v25, 0.0 }
 0x1a9   : > { %606 = vst [vmem:[%s298_s21] sm:$0x1] %v604_v26 }
 0x1aa PF: > { %p849_p4 = scmp.ge.s32.totalorder %s959_s27, 2  ;;  %s638_s22 = sand.u32 1, %s947_s24  }
 0x1ab   : > { %s639_s29 = scalar_lea.sflag [#allocation3], %s638_s22 }
 0x1ac   : > { %p846_p5 = pnand %p849_p4, %p1043_p6 }
 0x1ae   : > { %p847_p7 = pneg %p846_p5 }
 0x1b0   : > { %942 = dma.done.wait (%p847_p7), %s639_s29, 16  }
 0x1b1   : > { %944 = vsyncadd (%p847_p7), %s639_s29, 4294967280  ;;  %p18_p8 = scmp.ge.s32.totalorder %s1026_s30, 4   ;;  %s1185_s24 = smov %s951_s25 }
 0x1b2   : > { %s1186_s25 = smov %s955_s26  ;;  %s1187_s26 = smov %s1037_s10 }
 0x1b3   : > { %s1188_s27 = smov %s1026_s30  ;;  %20 = sbr.rel (!%p18_p8) target bundleno = 3 (0x3), region = 94 }
 0x1b8   :  { %650 = vsyncpa [#allocation3], 1 }
 0x1b9   :  { %652 = vsyncpa [#allocation3 + $0x1], 1 }

</bundles_post_ra>
